<compile_context>
chip_gen: v5e
topology: v5e:2x2
jax: 0.10.0
libtpu: 0.0.40
codegen_flags: <defaults>
</compile_context>

<pallas_src>
import jax
import jax.numpy as jnp
from jax.experimental import pallas as pl
from jax.experimental.pallas import tpu as pltpu

LANE = 128  # TPU lane width


def policy_kernel(xt_ref, w1t_ref, b1_ref, w2t_ref, b2_ref, ot_ref):
    # All tensors are "transposed": batch on the lane axis (last dim), all f32.
    # affline1: h^T = W1^T @ x^T + b1          -> (hidden, bm)
    h = jnp.dot(w1t_ref[...], xt_ref[...], preferred_element_type=jnp.float32)
    h = h + b1_ref[...]                         # (hidden, 1) broadcast over lanes
    # dropout (eval mode) -> identity; ReLU on the VPU
    h = jnp.maximum(h, 0.0)
    # affline2: s^T = W2^T @ h^T + b2          -> (act_n, bm), N = bm fills the MXU
    s = jnp.dot(w2t_ref[...], h, preferred_element_type=jnp.float32)
    s = s + b2_ref[...]                         # (act_n, 1) broadcast over lanes
    # softmax over the action axis (8 sublanes -> XLU reduce), numerically stable
    s = s - jnp.max(s, axis=0, keepdims=True)
    e = jnp.exp(s)
    ot_ref[...] = (e / jnp.sum(e, axis=0, keepdims=True)).astype(ot_ref.dtype)


def policy_forward(x, w1, b1, w2, b2, *, block_m=2048, min_grid_steps=2):
    """softmax(relu(x @ W1 + b1) @ W2 + b2), eval-mode dropout.

    x:  (B, obs_n) f32
    w1: (obs_n, hidden)   b1: (hidden,)
    w2: (hidden, act_n)   b2: (act_n,)
    returns (B, act_n) f32 probabilities.
    """
    B, obs_n = x.shape
    hidden = w1.shape[1]
    act_n = w2.shape[1]

    # --- batch tiling: batch lives on the 128-wide lane axis ---------------------
    b_lanes = ((B + LANE - 1) // LANE) * LANE
    n_steps = max(1, pl.cdiv(b_lanes, block_m))
    if b_lanes >= min_grid_steps * LANE:
        n_steps = max(n_steps, min_grid_steps)      # >=2 steps -> both v7x TCs busy
    bm = ((pl.cdiv(b_lanes, n_steps) + LANE - 1) // LANE) * LANE
    b_pad = n_steps * bm

    # --- lane-dense (transposed) layout: single layout pass over x ---------------
    xt = jnp.pad(x, ((0, b_pad - B), (0, 0))).T     # (obs_n, b_pad), pad fused w/ transpose
    w1t = w1.T                                      # (hidden, obs_n) - tiny, one-time
    w2t = w2.T                                      # (act_n, hidden)
    b1c = b1.reshape(hidden, 1)
    b2c = b2.reshape(act_n, 1)

    out_t = pl.pallas_call(
        policy_kernel,
        out_shape=jax.ShapeDtypeStruct((act_n, b_pad), jnp.float32),
        grid_spec=pltpu.PrefetchScalarGridSpec(
            num_scalar_prefetch=0,
            grid=(n_steps,),
            in_specs=[
                pl.BlockSpec((obs_n, bm), lambda i: (0, i)),      # x^T: tiled over batch lanes
                pl.BlockSpec((hidden, obs_n), lambda i: (0, 0)),  # W1^T: resident
                pl.BlockSpec((hidden, 1), lambda i: (0, 0)),      # b1:   resident
                pl.BlockSpec((act_n, hidden), lambda i: (0, 0)),  # W2^T: resident
                pl.BlockSpec((act_n, 1), lambda i: (0, 0)),       # b2:   resident
            ],
            out_specs=pl.BlockSpec((act_n, bm), lambda i: (0, i)),
        ),
        compiler_params=pltpu.CompilerParams(
            dimension_semantics=("parallel",),      # megacore sharding on v7x
        ),
    )(xt, w1t, b1c, w2t, b2c)

    return out_t[:, :B].T                           # back to (B, act_n)


def init_params(key, obs_n, act_n, hidden_size):
    # Mimic nn.Linear default init: U(-1/sqrt(fan_in), 1/sqrt(fan_in)).
    k1, k2, k3, k4 = jax.random.split(key, 4)
    bound1 = 1.0 / (obs_n ** 0.5)
    bound2 = 1.0 / (hidden_size ** 0.5)
    w1 = jax.random.uniform(k1, (obs_n, hidden_size), jnp.float32, -bound1, bound1)
    b1 = jax.random.uniform(k2, (hidden_size,), jnp.float32, -bound1, bound1)
    w2 = jax.random.uniform(k3, (hidden_size, act_n), jnp.float32, -bound2, bound2)
    b2 = jax.random.uniform(k4, (act_n,), jnp.float32, -bound2, bound2)
    return w1, b1, w2, b2


if __name__ == "__main__":
    obs_n, act_n, hidden_size = 16, 8, 128

    key = jax.random.PRNGKey(0)
    kx, kp = jax.random.split(key)
    w1, b1, w2, b2 = init_params(kp, obs_n, act_n, hidden_size)

    fwd = jax.jit(policy_forward, static_argnames=("block_m", "min_grid_steps"))

    # batch=8: single tile; batch=200: exercises lane padding + a 2-step grid.
    for batch in (8, 200):
        x = jax.random.normal(jax.random.fold_in(kx, batch), (batch, obs_n), jnp.float32)
        probs = jax.block_until_ready(fwd(x, w1, b1, w2, b2))

        # Full-f32 reference (PyTorch eval-mode semantics).
        hi = jax.lax.Precision.HIGHEST
        h_ref = jnp.maximum(jnp.dot(x, w1, precision=hi) + b1, 0.0)
        probs_ref = jax.nn.softmax(jnp.dot(h_ref, w2, precision=hi) + b2, axis=1)

        assert probs.shape == (batch, act_n)
        assert bool(jnp.all(jnp.isfinite(probs)))
        assert jnp.allclose(probs, probs_ref, atol=1e-4, rtol=1e-3), (
            "max abs err", float(jnp.max(jnp.abs(probs - probs_ref))))
        assert jnp.allclose(jnp.sum(probs, axis=1), 1.0, atol=1e-5)

    print("KERNEL_OK")
</pallas_src>

<mosaic_0001>
module attributes {stable_mosaic.version = 11 : i64} {
  func.func @policy_kernel(%arg0: i32, %arg1: memref<16x128xf32, #tpu.memory_space<vmem>>, %arg2: memref<128x16xf32, #tpu.memory_space<vmem>>, %arg3: memref<128x1xf32, #tpu.memory_space<vmem>>, %arg4: memref<8x128xf32, #tpu.memory_space<vmem>>, %arg5: memref<8x1xf32, #tpu.memory_space<vmem>>, %arg6: memref<8x128xf32, #tpu.memory_space<vmem>>) attributes {dimension_semantics = [#tpu.dimension_semantics<parallel>], iteration_bounds = array<i64: 1>, scalar_prefetch = 0 : i64, scratch_operands = 0 : i64, tpu.core_type = #tpu.core_type<tc>, window_params = [{transform_indices = @transform_0, window_bounds = array<i64: 16, 128>}, {pipeline_mode = #tpu.pipeline_mode<synchronous>, transform_indices = @transform_1, window_bounds = array<i64: 128, 16>}, {pipeline_mode = #tpu.pipeline_mode<synchronous>, transform_indices = @transform_2, window_bounds = array<i64: 128, 1>}, {pipeline_mode = #tpu.pipeline_mode<synchronous>, transform_indices = @transform_3, window_bounds = array<i64: 8, 128>}, {pipeline_mode = #tpu.pipeline_mode<synchronous>, transform_indices = @transform_4, window_bounds = array<i64: 8, 1>}, {transform_indices = @transform_5, window_bounds = array<i64: 8, 128>}]} {
    %c0 = arith.constant 0 : index
    %c0_0 = arith.constant 0 : index
    %0 = vector.load %arg2[%c0, %c0_0] : memref<128x16xf32, #tpu.memory_space<vmem>>, vector<128x16xf32>
    %c0_1 = arith.constant 0 : index
    %c0_2 = arith.constant 0 : index
    %1 = vector.load %arg1[%c0_1, %c0_2] : memref<16x128xf32, #tpu.memory_space<vmem>>, vector<16x128xf32>
    %cst = arith.constant dense<0.000000e+00> : vector<128x128xf32>
    %2 = tpu.matmul %0, %1, %cst {dimension_numbers = #tpu.dot_dimension_numbers<[1], [0], [0], [1], [0, 0, 1, 1], [], []>} : vector<128x16xf32>, vector<16x128xf32>, vector<128x128xf32> -> vector<128x128xf32>
    %c0_3 = arith.constant 0 : index
    %c0_4 = arith.constant 0 : index
    %3 = vector.load %arg3[%c0_3, %c0_4] : memref<128x1xf32, #tpu.memory_space<vmem>>, vector<128x1xf32>
    %4 = vector.broadcast %3 : vector<128x1xf32> to vector<128x128xf32>
    %5 = arith.addf %2, %4 : vector<128x128xf32>
    %cst_5 = arith.constant 0.000000e+00 : f32
    %6 = vector.broadcast %cst_5 : f32 to vector<128x128xf32>
    %7 = arith.maximumf %5, %6 : vector<128x128xf32>
    %c0_6 = arith.constant 0 : index
    %c0_7 = arith.constant 0 : index
    %8 = vector.load %arg4[%c0_6, %c0_7] : memref<8x128xf32, #tpu.memory_space<vmem>>, vector<8x128xf32>
    %cst_8 = arith.constant dense<0.000000e+00> : vector<8x128xf32>
    %9 = tpu.matmul %8, %7, %cst_8 {dimension_numbers = #tpu.dot_dimension_numbers<[1], [0], [0], [1], [0, 0, 1, 1], [], []>} : vector<8x128xf32>, vector<128x128xf32>, vector<8x128xf32> -> vector<8x128xf32>
    %c0_9 = arith.constant 0 : index
    %c0_10 = arith.constant 0 : index
    %10 = vector.load %arg5[%c0_9, %c0_10] : memref<8x1xf32, #tpu.memory_space<vmem>>, vector<8x1xf32>
    %11 = vector.broadcast %10 : vector<8x1xf32> to vector<8x128xf32>
    %12 = arith.addf %9, %11 : vector<8x128xf32>
    %cst_11 = arith.constant dense<0xFF800000> : vector<128xf32>
    %13 = vector.multi_reduction <maximumf>, %12, %cst_11 [0] : vector<8x128xf32> to vector<128xf32>
    %14 = vector.shape_cast %13 : vector<128xf32> to vector<1x128xf32>
    %15 = vector.broadcast %14 : vector<1x128xf32> to vector<8x128xf32>
    %16 = arith.subf %12, %15 : vector<8x128xf32>
    %17 = math.exp %16 : vector<8x128xf32>
    %cst_12 = arith.constant dense<0.000000e+00> : vector<128xf32>
    %18 = vector.multi_reduction <add>, %17, %cst_12 [0] : vector<8x128xf32> to vector<128xf32>
    %19 = vector.shape_cast %18 : vector<128xf32> to vector<1x128xf32>
    %20 = vector.broadcast %19 : vector<1x128xf32> to vector<8x128xf32>
    %21 = arith.divf %17, %20 : vector<8x128xf32>
    %c0_13 = arith.constant 0 : index
    %c0_14 = arith.constant 0 : index
    %22 = vector.load %arg6[%c0_13, %c0_14] : memref<8x128xf32, #tpu.memory_space<vmem>>, vector<8x128xf32>
    tpu.vector_store %arg6[%c0_13, %c0_14], %21 {strides = array<i32>} : memref<8x128xf32, #tpu.memory_space<vmem>>, vector<8x128xf32>,
    return
  }
  func.func @transform_0(%arg0: i32) -> (i32, i32) {
    %c0_i32 = arith.constant 0 : i32
    %c0_i32_0 = arith.constant 0 : i32
    return %c0_i32, %arg0 : i32, i32
  }
  func.func @transform_1(%arg0: i32) -> (i32, i32) {
    %c0_i32 = arith.constant 0 : i32
    %c0_i32_0 = arith.constant 0 : i32
    %c0_i32_1 = arith.constant 0 : i32
    return %c0_i32, %c0_i32_0 : i32, i32
  }
  func.func @transform_2(%arg0: i32) -> (i32, i32) {
    %c0_i32 = arith.constant 0 : i32
    %c0_i32_0 = arith.constant 0 : i32
    %c0_i32_1 = arith.constant 0 : i32
    return %c0_i32, %c0_i32_0 : i32, i32
  }
  func.func @transform_3(%arg0: i32) -> (i32, i32) {
    %c0_i32 = arith.constant 0 : i32
    %c0_i32_0 = arith.constant 0 : i32
    %c0_i32_1 = arith.constant 0 : i32
    return %c0_i32, %c0_i32_0 : i32, i32
  }
  func.func @transform_4(%arg0: i32) -> (i32, i32) {
    %c0_i32 = arith.constant 0 : i32
    %c0_i32_0 = arith.constant 0 : i32
    %c0_i32_1 = arith.constant 0 : i32
    return %c0_i32, %c0_i32_0 : i32, i32
  }
  func.func @transform_5(%arg0: i32) -> (i32, i32) {
    %c0_i32 = arith.constant 0 : i32
    %c0_i32_0 = arith.constant 0 : i32
    return %c0_i32, %arg0 : i32, i32
  }
}

</mosaic_0001>

<bundles_post_ra>
// kernel: policy_forward.1
= control target key start
LH: loop header
LB: loop body
LE: loop exit
PB: predicated region body
PF: predicated region fallthrough
CT: control target
= control target key end

     0   :  { %v354_v0 = vmov 0   ;;  %vm134_vm0 = vcmask 130048   ;;  %s515_s2 = inlined_call_operand.vmem [shape: f32[128,1], index: 2, kind: input, shape index: {}]   ;;  %s516_s0 = inlined_call_operand.vmem [shape: f32[16,128], index: 0, kind: input, shape index: {}]   ;;  %s517_s1 = inlined_call_operand.vmem [shape: f32[128,16], index: 1, kind: input, shape index: {}]   ;;  %s518_s4 = inlined_call_operand.vmem [shape: f32[8,1], index: 4, kind: input, shape index: {}]   ;;  %s519_s3 = inlined_call_operand.vmem [shape: f32[8,128], index: 3, kind: input, shape index: {}]   ;;  %s520_s5 = inlined_call_operand.vmem [shape: f32[8,128], index: 5, kind: output, shape index: {}]  }
   0x1   :  { %348 = vset.pattern.permute.xlu1 %v354_v0  ;;  %v51_v1 = vld [vmem:[%s515_s2 + $0x68] sm:$0xff]  ;;  %347 = vset.pattern.permute.xlu0 %v354_v0  ;;  %v53_v3 = vld [vmem:[%s515_s2 + $0x78] sm:$0xff]  ;;  %v36_v4 = vld [vmem:[%s516_s0] sm:$0xff] }
   0x2   :  { %v37_v2 = vld [vmem:[%s516_s0 + $0x8] sm:$0xff]  ;;  %121 = vperm.xlu1 %348, %v51_v1   ;;  %131 = vperm.xlu0 %347, %v53_v3   ;;  %v31_v6 = vld [vmem:[%s517_s1 + $0x58] sm:$0xff]  ;;  %v20_v7 = vld [vmem:[%s517_s1] sm:$0xff] }
   0x3   :  { %342 = vmatpush.msra.mxu2 %v37_v2  ;;  %v25_v5 = vld [vmem:[%s517_s1 + $0x28] sm:$0xff]  ;;  %343 = vmatpush.msra.mxu3 %v37_v2  ;;  %v50_v8 = vld [vmem:[%s515_s2 + $0x60] sm:$0xff]  ;;  %v52_v9 = vld [vmem:[%s515_s2 + $0x70] sm:$0xff] }
   0x4   :  { %197 = vmatpush.msra.mxu0 %v37_v2  ;;  %349 = vset.pattern.permute.xlu2 %v354_v0  ;;  %v26_v10 = vld [vmem:[%s517_s1 + $0x30] sm:$0xff]  ;;  %v49_v11 = vld [vmem:[%s515_s2 + $0x58] sm:$0xff]  ;;  %v32_v12 = vld [vmem:[%s517_s1 + $0x60] sm:$0xff] }
   0x5   :  { %344 = vmatpush.msra.mxu2 %v36_v4  ;;  %345 = vmatpush.msra.mxu3 %v36_v4  ;;  %v21_v13 = vld [vmem:[%s517_s1 + $0x8] sm:$0xff]  ;;  %v46_v14 = vld [vmem:[%s515_s2 + $0x40] sm:$0xff]  ;;  %v48_v16 = vld [vmem:[%s515_s2 + $0x50] sm:$0xff] }
   0x6   :  { %331 = vmatmul.msk.f32.vlgmr.msra.gmra.mxu2 %vm134_vm0, %v25_v5  ;;  %337 = vmatmul.msk.f32.vlgmr.msra.gmra.mxu3 %vm134_vm0, %v31_v6  ;;  %v47_v15 = vld [vmem:[%s515_s2 + $0x48] sm:$0xff]  ;;  %v27_v17 = vld [vmem:[%s517_s1 + $0x38] sm:$0xff]  ;;  %v22_v19 = vld [vmem:[%s517_s1 + $0x10] sm:$0xff] }
   0x7   :  { %198 = vmatpush.msra.mxu0 %v36_v4  ;;  %111 = vperm.xlu2 %349, %v49_v11   ;;  %v33_v18 = vld [vmem:[%s517_s1 + $0x68] sm:$0xff]  ;;  %v44_v21 = vld [vmem:[%s515_s2 + $0x30] sm:$0xff]  ;;  %v45_v22 = vld [vmem:[%s515_s2 + $0x38] sm:$0xff] }
   0x8   :  { %326 = vmatmul.msk.f32.vlgmr.msra.gmra.mxu0 %vm134_vm0, %v20_v7  ;;  %v43_v20 = vld [vmem:[%s515_s2 + $0x28] sm:$0xff]  ;;  %v28_v23 = vld [vmem:[%s517_s1 + $0x40] sm:$0xff]  ;;  %v34_v24 = vld [vmem:[%s517_s1 + $0x70] sm:$0xff] }
   0x9   :  { %v23_v25 = vld [vmem:[%s517_s1 + $0x18] sm:$0xff]  ;;  %v40_v26 = vld [vmem:[%s515_s2 + $0x10] sm:$0xff]  ;;  %v42_v28 = vld [vmem:[%s515_s2 + $0x20] sm:$0xff] }
   0xa   :  { %116 = vperm.xlu1 %348, %v50_v8   ;;  %126 = vperm.xlu0 %347, %v52_v9   ;;  %v41_v27 = vld [vmem:[%s515_s2 + $0x18] sm:$0xff]  ;;  %v29_v29 = vld [vmem:[%s517_s1 + $0x48] sm:$0xff]  ;;  %v24_v31 = vld [vmem:[%s517_s1 + $0x20] sm:$0xff] }
   0xb   :  { %v35_v30 = vld [vmem:[%s517_s1 + $0x78] sm:$0xff]  ;;  %v265_v32 = vld [vmem:[%s518_s4] sm:$0xff]  ;;  %v39_v34 = vld [vmem:[%s515_s2 + $0x8] sm:$0xff] }
   0xc   :  { %v38_v33 = vld [vmem:[%s515_s2] sm:$0xff]  ;;  %v30_v35 = vld [vmem:[%s517_s1 + $0x50] sm:$0xff] }
   0xe   :  { %332 = vmatmul.msk.f32.gmra.mxu2 %vm134_vm0, %v26_v10  ;;  %338 = vmatmul.msk.f32.gmra.mxu3 %vm134_vm0, %v32_v12 }
   0xf   :  { %106 = vperm.xlu2 %349, %v48_v16  }
  0x10   :  { %327 = vmatmul.msk.f32.gmra.mxu0 %vm134_vm0, %v21_v13 }
  0x12   :  { %96 = vperm.xlu1 %348, %v46_v14   ;;  %101 = vperm.xlu0 %347, %v47_v15  }
  0x16   :  { %333 = vmatmul.msk.f32.gmra.mxu2 %vm134_vm0, %v27_v17  ;;  %339 = vmatmul.msk.f32.gmra.mxu3 %vm134_vm0, %v33_v18 }
  0x17   :  { %91 = vperm.xlu2 %349, %v45_v22  }
  0x18   :  { %328 = vmatmul.msk.f32.gmra.mxu0 %vm134_vm0, %v22_v19 }
  0x1a   :  { %81 = vperm.xlu1 %348, %v43_v20   ;;  %86 = vperm.xlu0 %347, %v44_v21  }
  0x1e   :  { %334 = vmatmul.msk.f32.gmra.mxu2 %vm134_vm0, %v28_v23  ;;  %340 = vmatmul.msk.f32.gmra.mxu3 %vm134_vm0, %v34_v24 }
  0x1f   :  { %76 = vperm.xlu2 %349, %v42_v28  }
  0x20   :  { %329 = vmatmul.msk.f32.gmra.mxu0 %vm134_vm0, %v23_v25 }
  0x22   :  { %66 = vperm.xlu1 %348, %v40_v26   ;;  %71 = vperm.xlu0 %347, %v41_v27  }
  0x26   :  { %335 = vmatmul.msk.f32.gmra.mxu2 %vm134_vm0, %v29_v29  ;;  %341 = vmatmul.msk.f32.gmra.mxu3 %vm134_vm0, %v35_v30 }
  0x27   :  { %61 = vperm.xlu2 %349, %v39_v34  }
  0x28   :  { %330 = vmatmul.msk.f32.gmra.mxu0 %vm134_vm0, %v24_v31 }
  0x2a   :  { %268 = vperm.xlu1 %348, %v265_v32   ;;  %56 = vperm.xlu0 %347, %v38_v33  }
  0x2e   :  { %336 = vmatmul.msk.f32.gmra.mxu2 %vm134_vm0, %v30_v35 }
  0x61   :  { %v112_v43 = vpop.permute.xlu2 %111 }
  0x69   :  { %v107_v50 = vpop.permute.xlu2 %106 }
  0x71   :  { %v92_v60 = vpop.permute.xlu2 %91 }
  0x74   :  { %v132_v39 = vpop.permute.xlu0 %131  ;;  %v122_v45 = vpop.permute.xlu1 %121 }
  0x79   :  { %v77_v11 = vpop.permute.xlu2 %76 }
  0x7c   :  { %v127_v46 = vpop.permute.xlu0 %126  ;;  %v117_v51 = vpop.permute.xlu1 %116 }
  0x81   :  { %v62_v26 = vpop.permute.xlu2 %61 }
  0x84   :  { %v102_v52 = vpop.permute.xlu0 %101  ;;  %v97_v63 = vpop.permute.xlu1 %96 }
  0x85   :  { %v506_v41 = vpop.f32.mrf.mxu0 }
  0x89   :  { %v215_v36 = vpop.f32.mrf.mxu2  ;;  %v233_v37 = vpop.f32.mrf.mxu3 }
  0x8a   :  { %v234_v1 = vadd.f32 %v233_v37, %v112_v43 }
  0x8c   :  { %v87_v0 = vpop.permute.xlu0 %86  ;;  %v259_v7 = vmax.f32 %v234_v1, 0.0  ;;  %v82_v14 = vpop.permute.xlu1 %81 }
  0x8d   :  { %v203_v47 = vpop.f32.mrf.mxu0  ;;  %v216_v19 = vadd.f32 %v215_v36, %v82_v14  ;;  %v264_v36 = vld [vmem:[%s519_s3] sm:$0xff] }
  0x8e   :  { %v204_v31 = vadd.f32 %v203_v47, %v62_v26 }
  0x8f   :  { %v253_v23 = vmax.f32 %v216_v19, 0.0 }
  0x90   :  { %v249_v34 = vmax.f32 %v204_v31, 0.0 }
  0x91   :  { %v218_v38 = vpop.f32.mrf.mxu2  ;;  %v236_v40 = vpop.f32.mrf.mxu3 }
  0x92   :  { %v237_v61 = vadd.f32 %v236_v40, %v117_v51  ;;  %v219_v16 = vadd.f32 %v218_v38, %v87_v0 }
  0x94   :  { %v260_v5 = vmax.f32 %v237_v61, 0.0  ;;  %v72_v15 = vpop.permute.xlu0 %71  ;;  %v254_v21 = vmax.f32 %v219_v16, 0.0  ;;  %v67_v25 = vpop.permute.xlu1 %66 }
  0x95   :  { %v206_v53 = vpop.f32.mrf.mxu0 }
  0x96   :  { %v207_v27 = vadd.f32 %v206_v53, %v67_v25 }
  0x98   :  { %v250_v32 = vmax.f32 %v207_v27, 0.0 }
  0x99   :  { %v221_v42 = vpop.f32.mrf.mxu2  ;;  %v239_v44 = vpop.f32.mrf.mxu3 }
  0x9a   :  { %v240_v58 = vadd.f32 %v239_v44, %v122_v45  ;;  %v222_v12 = vadd.f32 %v221_v42, %v92_v60 }
  0x9c   :  { %v261_v2 = vmax.f32 %v240_v58, 0.0  ;;  %v255_v20 = vmax.f32 %v222_v12, 0.0  ;;  %v57_v29 = vpop.permute.xlu0 %56  ;;  %v269_v37 = vpop.permute.xlu1 %268 }
  0x9d   :  { %v209_v4 = vpop.f32.mrf.mxu0  ;;  %v201_v33 = vadd.f32 %v506_v41, %v57_v29 }
  0x9e   :  { %v210_v24 = vadd.f32 %v209_v4, %v72_v15 }
  0x9f   :  { %v248_v35 = vmax.f32 %v201_v33, 0.0 }
  0xa0   :  { %v251_v30 = vmax.f32 %v210_v24, 0.0 }
  0xa1   :  { %v224_v48 = vpop.f32.mrf.mxu2  ;;  %v242_v49 = vpop.f32.mrf.mxu3 }
  0xa2   :  { %v243_v56 = vadd.f32 %v242_v49, %v127_v46  ;;  %v225_v9 = vadd.f32 %v224_v48, %v97_v63 }
  0xa4   :  { %v262_v62 = vmax.f32 %v243_v56, 0.0  ;;  %v256_v17 = vmax.f32 %v225_v9, 0.0 }
  0xa5   :  { %v212_v18 = vpop.f32.mrf.mxu0 }
  0xa6   :  { %v213_v22 = vadd.f32 %v212_v18, %v77_v11 }
  0xa8   :  { %v252_v28 = vmax.f32 %v213_v22, 0.0 }
  0xa9   :  { %v227_v54 = vpop.f32.mrf.mxu2  ;;  %v245_v55 = vpop.f32.mrf.mxu3 }
  0xaa   :  { %v246_v57 = vadd.f32 %v245_v55, %v132_v39  ;;  %v228_v8 = vadd.f32 %v227_v54, %v102_v52 }
  0xac   :  { %v263_v59 = vmax.f32 %v246_v57, 0.0  ;;  %v257_v13 = vmax.f32 %v228_v8, 0.0 }
  0xae   :  { %271 = vmatpush.msra.mxu1 %v263_v59 }
  0xb0   :  { %272 = vmatpush.msra.mxu1 %v262_v62 }
  0xb1   :  { %v230_v3 = vpop.f32.mrf.mxu2 }
  0xb2   :  { %v231_v6 = vadd.f32 %v230_v3, %v107_v50  ;;  %273 = vmatpush.msra.mxu1 %v261_v2 }
  0xb4   :  { %274 = vmatpush.msra.mxu1 %v260_v5  ;;  %v258_v10 = vmax.f32 %v231_v6, 0.0 }
  0xb6   :  { %275 = vmatpush.msra.mxu1 %v259_v7 }
  0xb8   :  { %276 = vmatpush.msra.mxu1 %v258_v10 }
  0xba   :  { %277 = vmatpush.msra.mxu1 %v257_v13 }
  0xbc   :  { %278 = vmatpush.msra.mxu1 %v256_v17 }
  0xbe   :  { %279 = vmatpush.msra.mxu1 %v255_v20 }
  0xc0   :  { %280 = vmatpush.msra.mxu1 %v254_v21 }
  0xc2   :  { %281 = vmatpush.msra.mxu1 %v253_v23 }
  0xc4   :  { %282 = vmatpush.msra.mxu1 %v252_v28 }
  0xc6   :  { %283 = vmatpush.msra.mxu1 %v251_v30 }
  0xc8   :  { %284 = vmatpush.msra.mxu1 %v250_v32 }
  0xca   :  { %285 = vmatpush.msra.mxu1 %v249_v34 }
  0xcc   :  { %286 = vmatpush.msra.mxu1 %v248_v35 }
  0xcd   :  { %287 = vmatmul.f32.vlgmr.msra.gmra.mxu1 %v264_v36 }
 0x14a   :  { %v288_v38 = vpop.f32.mrf.mxu1 }
 0x14b   :  { %v289_v39 = vadd.f32 %v288_v38, %v269_v37 }
 0x14d   :  { %v291_v40 = vrot.slane %v289_v39, 4 }
 0x14f   :  { %v292_v42 = vmax.f32 %v289_v39, %v291_v40 }
 0x151   :  { %v293_v43 = vrot.slane %v292_v42, 2 }
 0x153   :  { %v294_v44 = vmax.f32 %v292_v42, %v293_v43 }
 0x155   :  { %v295_v45 = vrot.slane %v294_v44, 1 }
 0x157   :  { %v296_v41 = vmax.f32 %v294_v44, %v295_v45 }
 0x159   :  { %v297_v46 = vsub.f32 %v289_v39, %v296_v41 }
 0x15b   :  { %v298_v47 = vmul.f32 1.442695, %v297_v46 }
 0x15d   :  { %350 = vpow2.f32 %v298_v47 }
 0x163   :  { %v351_v48 = vpop.eup %350 }
 0x164   :  { %v300_v49 = vrot.slane %v351_v48, 4 }
 0x166   :  { %v301_v50 = vadd.f32 %v351_v48, %v300_v49 }
 0x168   :  { %v302_v51 = vrot.slane %v301_v50, 2 }
 0x16a   :  { %v303_v52 = vadd.f32 %v302_v51, %v301_v50 }
 0x16c   :  { %v304_v53 = vrot.slane %v303_v52, 1 }
 0x16e   :  { %v305_v54 = vadd.f32 %v304_v53, %v303_v52 }
 0x170   :  { %352 = vrcp.f32 %v305_v54  ;;  %v317_v58 = vand.u32 2147483648, %v305_v54  ;;  %v315_v60 = vand.u32 2147483647, %v305_v54  ;;  %vm311_vm2 = vweird.f32 %v305_v54 }
 0x172   :  { %v318_v62 = vor.u32 1.1754944e-38, %v317_v58  ;;  %vm316_vm4 = vcmp.eq.f32.partialorder %v315_v60, 8.507059e+37 }
 0x176   :  { %v353_v55 = vpop.eup %352 }
 0x177   :  { %v307_v56 = vmul.f32 %v353_v55, %v305_v54  ;;  %vm312_vm1 = vweird.f32 %v353_v55 }
 0x178   :  { %vm313_vm3 = vmor %vm311_vm2, %vm312_vm1 }
 0x179   :  { %v308_v57 = vsub.f32 1.0, %v307_v56 }
 0x17b   :  { %v309_v59 = vmul.f32 %v353_v55, %v308_v57 }
 0x17d   :  { %v310_v61 = vadd.f32 %v353_v55, %v309_v59 }
 0x17f   :  { %v314_v63 = vsel %vm313_vm3, %v353_v55, %v310_v61 }
 0x180   :  { %v319_v0 = vsel %vm316_vm4, %v318_v62, %v314_v63 }
 0x181   :  { %v320_v1 = vmul.f32 %v351_v48, %v319_v0 }
 0x183   :  { %321 = vst [vmem:[%s520_s5] sm:$0xff] %v320_v1 }

</bundles_post_ra>
